<compile_context>
chip_gen: v5e
topology: v5e:2x2
jax: 0.10.0
libtpu: 0.0.40
codegen_flags: <defaults>
</compile_context>

<pallas_src>
import jax
import jax.numpy as jnp
from jax import lax
from jax.experimental import pallas as pl
from jax.experimental.pallas import tpu as pltpu

# MXU-native input dtype on v5e/v6e/v7x.  Set to jnp.float32 for exact f32
# numerics (the correctness tolerance in __main__ is gated on this constant).
MATMUL_DTYPE = jnp.bfloat16
LANE = 128


def _round_up(n, m):
    return (n + m - 1) // m * m


def _layernorm_padded(x, gamma, beta, c, eps=1e-5):
    # x: (M, C_pad) f32 with real features in lanes [0, c) and zeros in the
    # padded lanes.  E[x^2] - mean^2 with a 1/c divisor is exact for the real
    # features and needs no lane mask; gamma/beta are zero in padded lanes,
    # so the output padded lanes stay zero.
    inv_c = 1.0 / c
    mean = jnp.sum(x, axis=-1, keepdims=True) * inv_c
    ex2 = jnp.sum(x * x, axis=-1, keepdims=True) * inv_c
    var = ex2 - mean * mean
    return (x - mean) * lax.rsqrt(var + eps) * gamma + beta


def _make_block_kernel(B, T, C, C_pad, matmul_dtype):
    M = B * T

    def kernel(x_ref, wqkv_ref, g1_ref, b1_ref, wf_ref, bf_ref,
               g2_ref, b2_ref, out_ref):
        x = x_ref[...]                                   # (M, C_pad) f32, VMEM-resident

        # ---- LayerNorm 1 (f32, VPU/EUP) ----
        h = _layernorm_padded(x, g1_ref[...], b1_ref[...], C)

        # ---- Fused QKV projection: one MXU matmul (bf16 in, f32 acc) ----
        # 1/sqrt(head_size) is pre-folded into the Q columns; each segment is
        # padded to a 128-lane boundary so the slices below are free views.
        qkv = jnp.dot(h.astype(matmul_dtype), wqkv_ref[...],
                      preferred_element_type=jnp.float32)       # (M, 3*C_pad) f32
        q = qkv[:, :C_pad]
        k = qkv[:, C_pad:2 * C_pad]
        v = qkv[:, 2 * C_pad:]

        # ---- Flattened attention scores: one (M, M) MXU op, no K transpose ----
        scores = lax.dot_general(
            q.astype(matmul_dtype), k.astype(matmul_dtype),
            dimension_numbers=(((1,), (1,)), ((), ())),
            preferred_element_type=jnp.float32)                 # (M, M)

        # Block-diagonal (per-batch) causal mask, built without integer div:
        # row_start[i, :] = (i // T) * T via a (B, T, M) iota over the batch dim.
        row = lax.broadcasted_iota(jnp.int32, (M, M), 0)
        col = lax.broadcasted_iota(jnp.int32, (M, M), 1)
        row_start = lax.broadcasted_iota(jnp.int32, (B, T, M), 0).reshape(M, M) * T
        allowed = (col <= row) & (col >= row_start)
        # Large finite negative (not -inf): no NaN risk even for masked rows.
        scores = jnp.where(allowed, scores, jnp.float32(-1e30))

        # ---- Numerically-stable softmax with deferred normalization ----
        m = jnp.max(scores, axis=-1, keepdims=True)
        e = jnp.exp(scores - m)                                 # masked entries -> 0
        denom = jnp.sum(e, axis=-1, keepdims=True)              # (M, 1)
        ctx = jnp.dot(e.astype(matmul_dtype), v.astype(matmul_dtype),
                      preferred_element_type=jnp.float32)       # (M, C_pad), unnormalized
        r = pl.reciprocal(denom, approx=True)                   # EUP vrcp (free slot)
        r = r * (2.0 - denom * r)                               # one Newton step
        ctx = ctx * r

        # ---- Residual 1 ----
        x1 = x + ctx

        # ---- LayerNorm 2 + feedforward (Linear with bias) ----
        h2 = _layernorm_padded(x1, g2_ref[...], b2_ref[...], C)
        ff = jnp.dot(h2.astype(matmul_dtype), wf_ref[...],
                     preferred_element_type=jnp.float32) + bf_ref[...]

        # ---- Residual 2: lane-dense (multiple-of-128) unmasked store ----
        out_ref[...] = x1 + ff

    return kernel


def pack_params(params, n_embd, matmul_dtype=MATMUL_DTYPE):
    """One-time packing: fuse QKV, fold the attention scale, pad every last
    dim to a 128-lane boundary, and cast matmul weights to the MXU dtype."""
    C = n_embd
    C_pad = _round_up(max(C, LANE), LANE)
    scale = 1.0 / (C ** 0.5)  # head_size == n_embd (single head)

    wqkv = jnp.zeros((C_pad, 3 * C_pad), jnp.float32)
    wqkv = wqkv.at[:C, 0:C].set(params["wq"] * scale)
    wqkv = wqkv.at[:C, C_pad:C_pad + C].set(params["wk"])
    wqkv = wqkv.at[:C, 2 * C_pad:2 * C_pad + C].set(params["wv"])

    wf = jnp.zeros((C_pad, C_pad), jnp.float32).at[:C, :C].set(params["wf"])

    def pad_row(v):
        return jnp.zeros((1, C_pad), jnp.float32).at[:, :C].set(v)

    return dict(
        wqkv=wqkv.astype(matmul_dtype),
        wf=wf.astype(matmul_dtype),
        bf=pad_row(params["bf"]),
        g1=pad_row(params["g1"]), b1=pad_row(params["b1"]),
        g2=pad_row(params["g2"]), b2=pad_row(params["b2"]),
    )


def block_forward(x, packed):
    """x: (B, T, C) float32; packed: output of pack_params."""
    B, T, C = x.shape
    C_pad = packed["wf"].shape[0]
    M = B * T

    # Lane-pad the activations: padded lanes stay zero end-to-end.
    x_pad = jnp.zeros((M, C_pad), jnp.float32).at[:, :C].set(x.reshape(M, C))

    out_pad = pl.pallas_call(
        _make_block_kernel(B, T, C, C_pad, packed["wqkv"].dtype),
        out_shape=jax.ShapeDtypeStruct((M, C_pad), jnp.float32),
        # No grid: whole problem is a single VMEM-resident block at this size.
        input_output_aliases={0: 0},   # reuse the padded activation buffer
        compiler_params=pltpu.CompilerParams(vmem_limit_bytes=32 * 1024 * 1024),
    )(x_pad, packed["wqkv"], packed["g1"], packed["b1"],
      packed["wf"], packed["bf"], packed["g2"], packed["b2"])

    return out_pad[:, :C].reshape(B, T, C)


def make_params(key, n_embd):
    """Deterministic synthetic parameters (shapes from the PyTorch module)."""
    ks = jax.random.split(key, 5)
    scale = 1.0 / (n_embd ** 0.5)
    # PyTorch Linear weight is (out, in); stored transposed (in, out) for x @ W.
    wk = jax.random.uniform(ks[0], (n_embd, n_embd), jnp.float32, -scale, scale)
    wq = jax.random.uniform(ks[1], (n_embd, n_embd), jnp.float32, -scale, scale)
    wv = jax.random.uniform(ks[2], (n_embd, n_embd), jnp.float32, -scale, scale)
    wf = jax.random.uniform(ks[3], (n_embd, n_embd), jnp.float32, -scale, scale)
    bf = jax.random.uniform(ks[4], (1, n_embd), jnp.float32, -scale, scale)
    g1 = jnp.ones((1, n_embd), jnp.float32)
    b1 = jnp.zeros((1, n_embd), jnp.float32)
    g2 = jnp.ones((1, n_embd), jnp.float32)
    b2 = jnp.zeros((1, n_embd), jnp.float32)
    return dict(wk=wk, wq=wq, wv=wv, g1=g1, b1=b1, wf=wf, bf=bf, g2=g2, b2=b2)


def block_reference(x, p):
    """Pure-JAX f32 reference matching the PyTorch forward (raw weights)."""
    def ln(v, g, b):
        mu = jnp.mean(v, axis=-1, keepdims=True)
        var = jnp.mean((v - mu) ** 2, axis=-1, keepdims=True)
        return (v - mu) / jnp.sqrt(var + 1e-5) * g + b

    B, T, C = x.shape
    h = ln(x, p["g1"], p["b1"])
    K = h @ p["wk"]; Q = h @ p["wq"]; V = h @ p["wv"]
    dot = (Q @ jnp.swapaxes(K, -1, -2)) / (C ** 0.5)
    mask = jnp.tril(jnp.ones((T, T), bool))[None]
    dot = jnp.where(mask, dot, -jnp.inf)
    w = jax.nn.softmax(dot, axis=-1)
    x1 = x + w @ V
    h2 = ln(x1, p["g2"], p["b2"])
    return x1 + h2 @ p["wf"] + p["bf"]


if __name__ == "__main__":
    B, T, C = 2, 8, 32  # batch, seq, n_embd
    key = jax.random.PRNGKey(0)
    kx, kp = jax.random.split(key)
    x = jax.random.normal(kx, (B, T, C), jnp.float32)
    params = make_params(kp, C)
    packed = pack_params(params, C)   # one-time: fuse, fold scale, pad, cast

    ref = block_reference(x, params)

    fwd = jax.jit(block_forward)
    out = jax.block_until_ready(fwd(x, packed))

    # Tolerance is gated on the matmul dtype: exact f32 -> 1e-4; bf16 MXU
    # inputs with f32 accumulation -> ~1e-2-level agreement with the f32 ref.
    exact_f32 = jnp.dtype(MATMUL_DTYPE) == jnp.dtype(jnp.float32)
    tol = 1e-4 if exact_f32 else 2e-2

    assert out.shape == (B, T, C)
    assert jnp.allclose(out, ref, atol=tol, rtol=tol), "mismatch vs JAX reference"
    print("KERNEL_OK")
</pallas_src>

<mosaic_0001>
module attributes {stable_mosaic.version = 11 : i64} {
  func.func @kernel(%arg0: memref<16x128xf32, #tpu.memory_space<vmem>>, %arg1: memref<128x384xbf16, #tpu.memory_space<vmem>>, %arg2: memref<1x128xf32, #tpu.memory_space<vmem>>, %arg3: memref<1x128xf32, #tpu.memory_space<vmem>>, %arg4: memref<128x128xbf16, #tpu.memory_space<vmem>>, %arg5: memref<1x128xf32, #tpu.memory_space<vmem>>, %arg6: memref<1x128xf32, #tpu.memory_space<vmem>>, %arg7: memref<1x128xf32, #tpu.memory_space<vmem>>, %arg8: memref<16x128xf32, #tpu.memory_space<vmem>>) attributes {dimension_semantics = [], scalar_prefetch = 0 : i64, scratch_operands = 0 : i64, tpu.core_type = #tpu.core_type<tc>} {
    %c0 = arith.constant 0 : index
    %c0_0 = arith.constant 0 : index
    %0 = vector.load %arg0[%c0, %c0_0] : memref<16x128xf32, #tpu.memory_space<vmem>>, vector<16x128xf32>
    %c0_1 = arith.constant 0 : index
    %c0_2 = arith.constant 0 : index
    %1 = vector.load %arg2[%c0_1, %c0_2] : memref<1x128xf32, #tpu.memory_space<vmem>>, vector<1x128xf32>
    %c0_3 = arith.constant 0 : index
    %c0_4 = arith.constant 0 : index
    %2 = vector.load %arg3[%c0_3, %c0_4] : memref<1x128xf32, #tpu.memory_space<vmem>>, vector<1x128xf32>
    %cst = arith.constant dense<0.000000e+00> : vector<16xf32>
    %3 = vector.multi_reduction <add>, %0, %cst [1] : vector<16x128xf32> to vector<16xf32>
    %4 = vector.shape_cast %3 : vector<16xf32> to vector<16x1xf32>
    %cst_5 = arith.constant 3.125000e-02 : f32
    %5 = vector.broadcast %cst_5 : f32 to vector<16x1xf32>
    %6 = arith.mulf %4, %5 : vector<16x1xf32>
    %7 = arith.mulf %0, %0 : vector<16x128xf32>
    %cst_6 = arith.constant dense<0.000000e+00> : vector<16xf32>
    %8 = vector.multi_reduction <add>, %7, %cst_6 [1] : vector<16x128xf32> to vector<16xf32>
    %9 = vector.shape_cast %8 : vector<16xf32> to vector<16x1xf32>
    %cst_7 = arith.constant 3.125000e-02 : f32
    %10 = vector.broadcast %cst_7 : f32 to vector<16x1xf32>
    %11 = arith.mulf %9, %10 : vector<16x1xf32>
    %12 = arith.mulf %6, %6 : vector<16x1xf32>
    %13 = arith.subf %11, %12 : vector<16x1xf32>
    %14 = vector.broadcast %6 : vector<16x1xf32> to vector<16x128xf32>
    %15 = arith.subf %0, %14 : vector<16x128xf32>
    %cst_8 = arith.constant 9.99999974E-6 : f32
    %16 = vector.broadcast %cst_8 : f32 to vector<16x1xf32>
    %17 = arith.addf %13, %16 : vector<16x1xf32>
    %18 = math.rsqrt %17 : vector<16x1xf32>
    %19 = vector.broadcast %18 : vector<16x1xf32> to vector<16x128xf32>
    %20 = arith.mulf %15, %19 : vector<16x128xf32>
    %21 = vector.broadcast %1 : vector<1x128xf32> to vector<16x128xf32>
    %22 = arith.mulf %20, %21 : vector<16x128xf32>
    %23 = vector.broadcast %2 : vector<1x128xf32> to vector<16x128xf32>
    %24 = arith.addf %22, %23 : vector<16x128xf32>
    %25 = arith.truncf %24 : vector<16x128xf32> to vector<16x128xbf16>
    %c0_9 = arith.constant 0 : index
    %c0_10 = arith.constant 0 : index
    %26 = vector.load %arg1[%c0_9, %c0_10] : memref<128x384xbf16, #tpu.memory_space<vmem>>, vector<128x384xbf16>
    %cst_11 = arith.constant dense<0.000000e+00> : vector<16x384xf32>
    %27 = tpu.matmul %25, %26, %cst_11 {dimension_numbers = #tpu.dot_dimension_numbers<[1], [0], [0], [1], [0, 0, 1, 1], [], []>} : vector<16x128xbf16>, vector<128x384xbf16>, vector<16x384xf32> -> vector<16x384xf32>
    %28 = vector.extract_strided_slice %27 {offsets = [0, 0], sizes = [16, 128], strides = [1, 1]} : vector<16x384xf32> to vector<16x128xf32>
    %29 = vector.extract_strided_slice %27 {offsets = [0, 128], sizes = [16, 128], strides = [1, 1]} : vector<16x384xf32> to vector<16x128xf32>
    %30 = vector.extract_strided_slice %27 {offsets = [0, 256], sizes = [16, 128], strides = [1, 1]} : vector<16x384xf32> to vector<16x128xf32>
    %31 = arith.truncf %28 : vector<16x128xf32> to vector<16x128xbf16>
    %32 = arith.truncf %29 : vector<16x128xf32> to vector<16x128xbf16>
    %cst_12 = arith.constant dense<0.000000e+00> : vector<16x16xf32>
    %33 = tpu.matmul %31, %32, %cst_12 {dimension_numbers = #tpu.dot_dimension_numbers<[1], [1], [0], [0], [0, 0, 1, 0], [], []>} : vector<16x128xbf16>, vector<16x128xbf16>, vector<16x16xf32> -> vector<16x16xf32>
    %34 = tpu.iota {dimensions = array<i32: 0>} : vector<16x16xi32>
    %35 = tpu.iota {dimensions = array<i32: 1>} : vector<16x16xi32>
    %36 = tpu.iota {dimensions = array<i32: 0>} : vector<2x8x16xi32>
    %37 = vector.shape_cast %36 : vector<2x8x16xi32> to vector<16x16xi32>
    %c8_i32 = arith.constant 8 : i32
    %38 = vector.broadcast %c8_i32 : i32 to vector<16x16xi32>
    %39 = arith.muli %37, %38 : vector<16x16xi32>
    %40 = arith.cmpi sle, %35, %34 : vector<16x16xi32>
    %41 = arith.cmpi sge, %35, %39 : vector<16x16xi32>
    %42 = arith.andi %40, %41 : vector<16x16xi1>
    %cst_13 = arith.constant -1.000000e+30 : f32
    %43 = vector.broadcast %cst_13 : f32 to vector<16x16xf32>
    %44 = arith.select %42, %33, %43 : vector<16x16xi1>, vector<16x16xf32>
    %cst_14 = arith.constant dense<0xFF800000> : vector<16xf32>
    %45 = vector.multi_reduction <maximumf>, %44, %cst_14 [1] : vector<16x16xf32> to vector<16xf32>
    %46 = vector.shape_cast %45 : vector<16xf32> to vector<16x1xf32>
    %47 = vector.broadcast %46 : vector<16x1xf32> to vector<16x16xf32>
    %48 = arith.subf %44, %47 : vector<16x16xf32>
    %49 = math.exp %48 : vector<16x16xf32>
    %cst_15 = arith.constant dense<0.000000e+00> : vector<16xf32>
    %50 = vector.multi_reduction <add>, %49, %cst_15 [1] : vector<16x16xf32> to vector<16xf32>
    %51 = vector.shape_cast %50 : vector<16xf32> to vector<16x1xf32>
    %52 = arith.truncf %49 : vector<16x16xf32> to vector<16x16xbf16>
    %53 = arith.truncf %30 : vector<16x128xf32> to vector<16x128xbf16>
    %cst_16 = arith.constant dense<0.000000e+00> : vector<16x128xf32>
    %54 = tpu.matmul %52, %53, %cst_16 {dimension_numbers = #tpu.dot_dimension_numbers<[1], [0], [0], [1], [0, 0, 1, 1], [], []>} : vector<16x16xbf16>, vector<16x128xbf16>, vector<16x128xf32> -> vector<16x128xf32>
    %55 = tpu.reciprocal %51 {approx = true} : vector<16x1xf32> -> vector<16x1xf32>
    %56 = arith.mulf %51, %55 : vector<16x1xf32>
    %cst_17 = arith.constant 2.000000e+00 : f32
    %57 = vector.broadcast %cst_17 : f32 to vector<16x1xf32>
    %58 = arith.subf %57, %56 : vector<16x1xf32>
    %59 = arith.mulf %55, %58 : vector<16x1xf32>
    %60 = vector.broadcast %59 : vector<16x1xf32> to vector<16x128xf32>
    %61 = arith.mulf %54, %60 : vector<16x128xf32>
    %62 = arith.addf %0, %61 : vector<16x128xf32>
    %c0_18 = arith.constant 0 : index
    %c0_19 = arith.constant 0 : index
    %63 = vector.load %arg6[%c0_18, %c0_19] : memref<1x128xf32, #tpu.memory_space<vmem>>, vector<1x128xf32>
    %c0_20 = arith.constant 0 : index
    %c0_21 = arith.constant 0 : index
    %64 = vector.load %arg7[%c0_20, %c0_21] : memref<1x128xf32, #tpu.memory_space<vmem>>, vector<1x128xf32>
    %cst_22 = arith.constant dense<0.000000e+00> : vector<16xf32>
    %65 = vector.multi_reduction <add>, %62, %cst_22 [1] : vector<16x128xf32> to vector<16xf32>
    %66 = vector.shape_cast %65 : vector<16xf32> to vector<16x1xf32>
    %cst_23 = arith.constant 3.125000e-02 : f32
    %67 = vector.broadcast %cst_23 : f32 to vector<16x1xf32>
    %68 = arith.mulf %66, %67 : vector<16x1xf32>
    %69 = arith.mulf %62, %62 : vector<16x128xf32>
    %cst_24 = arith.constant dense<0.000000e+00> : vector<16xf32>
    %70 = vector.multi_reduction <add>, %69, %cst_24 [1] : vector<16x128xf32> to vector<16xf32>
    %71 = vector.shape_cast %70 : vector<16xf32> to vector<16x1xf32>
    %cst_25 = arith.constant 3.125000e-02 : f32
    %72 = vector.broadcast %cst_25 : f32 to vector<16x1xf32>
    %73 = arith.mulf %71, %72 : vector<16x1xf32>
    %74 = arith.mulf %68, %68 : vector<16x1xf32>
    %75 = arith.subf %73, %74 : vector<16x1xf32>
    %76 = vector.broadcast %68 : vector<16x1xf32> to vector<16x128xf32>
    %77 = arith.subf %62, %76 : vector<16x128xf32>
    %cst_26 = arith.constant 9.99999974E-6 : f32
    %78 = vector.broadcast %cst_26 : f32 to vector<16x1xf32>
    %79 = arith.addf %75, %78 : vector<16x1xf32>
    %80 = math.rsqrt %79 : vector<16x1xf32>
    %81 = vector.broadcast %80 : vector<16x1xf32> to vector<16x128xf32>
    %82 = arith.mulf %77, %81 : vector<16x128xf32>
    %83 = vector.broadcast %63 : vector<1x128xf32> to vector<16x128xf32>
    %84 = arith.mulf %82, %83 : vector<16x128xf32>
    %85 = vector.broadcast %64 : vector<1x128xf32> to vector<16x128xf32>
    %86 = arith.addf %84, %85 : vector<16x128xf32>
    %87 = arith.truncf %86 : vector<16x128xf32> to vector<16x128xbf16>
    %c0_27 = arith.constant 0 : index
    %c0_28 = arith.constant 0 : index
    %88 = vector.load %arg4[%c0_27, %c0_28] : memref<128x128xbf16, #tpu.memory_space<vmem>>, vector<128x128xbf16>
    %cst_29 = arith.constant dense<0.000000e+00> : vector<16x128xf32>
    %89 = tpu.matmul %87, %88, %cst_29 {dimension_numbers = #tpu.dot_dimension_numbers<[1], [0], [0], [1], [0, 0, 1, 1], [], []>} : vector<16x128xbf16>, vector<128x128xbf16>, vector<16x128xf32> -> vector<16x128xf32>
    %c0_30 = arith.constant 0 : index
    %c0_31 = arith.constant 0 : index
    %90 = vector.load %arg5[%c0_30, %c0_31] : memref<1x128xf32, #tpu.memory_space<vmem>>, vector<1x128xf32>
    %91 = vector.broadcast %90 : vector<1x128xf32> to vector<16x128xf32>
    %92 = arith.addf %89, %91 : vector<16x128xf32>
    %93 = arith.addf %62, %92 : vector<16x128xf32>
    %c0_32 = arith.constant 0 : index
    %c0_33 = arith.constant 0 : index
    %94 = vector.load %arg8[%c0_32, %c0_33] : memref<16x128xf32, #tpu.memory_space<vmem>>, vector<16x128xf32>
    tpu.vector_store %arg8[%c0_32, %c0_33], %93 {strides = array<i32>} : memref<16x128xf32, #tpu.memory_space<vmem>>, vector<16x128xf32>,
    return
  }
}

</mosaic_0001>

<bundles_post_ra>
// kernel: block_forward.1
= control target key start
LH: loop header
LB: loop body
LE: loop exit
PB: predicated region body
PF: predicated region fallthrough
CT: control target
= control target key end

     0   :  { %13 = vsyncpa [#allocation3], 0  ;;  %s745_s30 = smov [#allocation2]   ;;  %s746_s10 = smov 192   ;;  %s880_s0 = inlined_call_operand.vmem [shape: f32[16,128], index: 0, kind: input, shape index: {}, may-alias: {0,8}]   ;;  %s881_s1 = inlined_call_operand.hbm [shape: bf16[128,384], index: 1, kind: input, shape index: {}]   ;;  %s882_s2 = inlined_call_operand.vmem [shape: f32[1,128], index: 2, kind: input, shape index: {}]   ;;  %s883_s3 = inlined_call_operand.vmem [shape: f32[1,128], index: 3, kind: input, shape index: {}]   ;;  %s884_s4 = inlined_call_operand.vmem [shape: bf16[128,128], index: 4, kind: input, shape index: {}]   ;;  %s885_s5 = inlined_call_operand.vmem [shape: f32[1,128], index: 5, kind: input, shape index: {}]   ;;  %s886_s6 = inlined_call_operand.vmem [shape: f32[1,128], index: 6, kind: input, shape index: {}]   ;;  %s887_s7 = inlined_call_operand.vmem [shape: f32[1,128], index: 7, kind: input, shape index: {}]   ;;  %s888_s8 = inlined_call_operand.vmem [shape: f32[16,128], index: 8, kind: output, shape index: {}, may-alias: {0,8}]  }
   0x1   :  { %s20_s29 = sshll.u32 %s881_s1, 4  ;;  %s22_s9 = sshll.u32 %s745_s30, 4  ;;  %s21_s29 = int_to_ptr.hbm [resolvable:$true] %s20_s29  ;;  %s23_s9 = int_to_ptr.vmem [resolvable:$true] %s22_s9 }
   0x2   :  { %s747_s11 = smov 12  }
   0x3   :  { %28 = dma.hbm_to_vmem [thread:$0]  %s21_s29, 3072, %s23_s9, [#allocation3], %s746_s10, %s746_s10, %s747_s11  }
   0x4   :  { %743 = dma.done.wait [#allocation3], 3072  }
   0x5   :  { %744 = vsyncadd [#allocation3], 4294964224  ;;  %v799_v0 = vld [vmem:[%s880_s0] sm:$0xff]  ;;  %v807_v2 = vld [vmem:[%s880_s0 + $0x8] sm:$0xff]  ;;  %vm336_vm7 = vcmask 130048  }
   0x6   :  { %50 = vadd.xlane.f32.xlu0 %v799_v0  ;;  %v56_v1 = vmul.f32 %v799_v0, %v799_v0  ;;  %v57_v3 = vmul.f32 %v807_v2, %v807_v2  ;;  %v620_v4 = vld [vmem:[#allocation2 + $0xa8] sm:$0xf]  ;;  %v685_v5 = vld [vmem:[#allocation2 + $0xb0] sm:$0xf0]  ;;  %v684_v6 = vld [vmem:[#allocation2 + $0xac] sm:$0xf] }
   0x7   :  { %v621_v7 = vor.u32 %v685_v5, %v620_v4  ;;  %v622_v8 = vld [vmem:[#allocation2 + $0xb4] sm:$0xf0]  ;;  %v628_v9 = vld [vmem:[#allocation2 + $0xb0] sm:$0xf]  ;;  %v686_v10 = vld [vmem:[#allocation2 + $0xb8] sm:$0xf0] }
   0x8   :  { %58 = vadd.xlane.f32.xlu1 %v56_v1  ;;  %v625_v11 = vor.u32 %v684_v6, %v622_v8  ;;  %v629_v12 = vor.u32 %v686_v10, %v628_v9  ;;  %v608_v13 = vld [vmem:[#allocation2 + $0x90] sm:$0xf]  ;;  %v682_v14 = vld [vmem:[#allocation2 + $0x98] sm:$0xf0]  ;;  %v681_v15 = vld [vmem:[#allocation2 + $0x94] sm:$0xf] }
   0x9   :  { %265 = vmatpush.bf16.msra.mxu0 %v621_v7  ;;  %v609_v16 = vor.u32 %v682_v14, %v608_v13  ;;  %v610_v17 = vld [vmem:[#allocation2 + $0x9c] sm:$0xf0]  ;;  %v616_v18 = vld [vmem:[#allocation2 + $0x98] sm:$0xf]  ;;  %v683_v19 = vld [vmem:[#allocation2 + $0xa0] sm:$0xf0] }
   0xa   :  { %279 = vmatpush.bf16.msra.mxu1 %v625_v11  ;;  %293 = vmatpush.bf16.msra.mxu2 %v629_v12  ;;  %v613_v20 = vor.u32 %v681_v15, %v610_v17  ;;  %v617_v21 = vor.u32 %v683_v19, %v616_v18  ;;  %v596_v22 = vld [vmem:[#allocation2 + $0x78] sm:$0xf]  ;;  %v679_v23 = vld [vmem:[#allocation2 + $0x80] sm:$0xf0]  ;;  %v678_v24 = vld [vmem:[#allocation2 + $0x7c] sm:$0xf] }
   0xb   :  { %v597_v25 = vor.u32 %v679_v23, %v596_v22  ;;  %v598_v26 = vld [vmem:[#allocation2 + $0x84] sm:$0xf0]  ;;  %v604_v27 = vld [vmem:[#allocation2 + $0x80] sm:$0xf]  ;;  %v680_v28 = vld [vmem:[#allocation2 + $0x88] sm:$0xf0] }
   0xc   :  { %v601_v29 = vor.u32 %v678_v24, %v598_v26  ;;  %v605_v30 = vor.u32 %v680_v28, %v604_v27  ;;  %v584_v31 = vld [vmem:[#allocation2 + $0x60] sm:$0xf]  ;;  %v676_v32 = vld [vmem:[#allocation2 + $0x68] sm:$0xf0]  ;;  %v675_v33 = vld [vmem:[#allocation2 + $0x64] sm:$0xf] }
   0xd   :  { %266 = vmatpush.bf16.msra.mxu0 %v609_v16  ;;  %v585_v34 = vor.u32 %v676_v32, %v584_v31  ;;  %v586_v35 = vld [vmem:[#allocation2 + $0x6c] sm:$0xf0]  ;;  %v592_v36 = vld [vmem:[#allocation2 + $0x68] sm:$0xf]  ;;  %v677_v37 = vld [vmem:[#allocation2 + $0x70] sm:$0xf0] }
   0xe   :  { %52 = vadd.xlane.f32.xlu0 %v807_v2  ;;  %280 = vmatpush.bf16.msra.mxu1 %v613_v20  ;;  %v589_v38 = vor.u32 %v675_v33, %v586_v35  ;;  %v593_v39 = vor.u32 %v677_v37, %v592_v36  ;;  %v572_v40 = vld [vmem:[#allocation2 + $0x48] sm:$0xf]  ;;  %v673_v41 = vld [vmem:[#allocation2 + $0x50] sm:$0xf0]  ;;  %v672_v42 = vld [vmem:[#allocation2 + $0x4c] sm:$0xf] }
   0xf   :  { %294 = vmatpush.bf16.msra.mxu2 %v617_v21  ;;  %v573_v43 = vor.u32 %v673_v41, %v572_v40  ;;  %v574_v44 = vld [vmem:[#allocation2 + $0x54] sm:$0xf0]  ;;  %v580_v45 = vld [vmem:[#allocation2 + $0x50] sm:$0xf]  ;;  %v674_v46 = vld [vmem:[#allocation2 + $0x58] sm:$0xf0] }
  0x10   :  { %60 = vadd.xlane.f32.xlu1 %v57_v3  ;;  %v577_v47 = vor.u32 %v672_v42, %v574_v44  ;;  %v581_v48 = vor.u32 %v674_v46, %v580_v45  ;;  %v560_v49 = vld [vmem:[#allocation2 + $0x30] sm:$0xf]  ;;  %v670_v50 = vld [vmem:[#allocation2 + $0x38] sm:$0xf0]  ;;  %v669_v51 = vld [vmem:[#allocation2 + $0x34] sm:$0xf] }
  0x11   :  { %267 = vmatpush.bf16.msra.mxu0 %v597_v25  ;;  %v561_v52 = vor.u32 %v670_v50, %v560_v49  ;;  %v562_v53 = vld [vmem:[#allocation2 + $0x3c] sm:$0xf0]  ;;  %v568_v54 = vld [vmem:[#allocation2 + $0x38] sm:$0xf]  ;;  %v671_v55 = vld [vmem:[#allocation2 + $0x40] sm:$0xf0] }
  0x12   :  { %281 = vmatpush.bf16.msra.mxu1 %v601_v29  ;;  %v565_v56 = vor.u32 %v669_v51, %v562_v53  ;;  %v569_v57 = vor.u32 %v671_v55, %v568_v54  ;;  %v548_v60 = vld [vmem:[#allocation2 + $0x18] sm:$0xf]  ;;  %v667_v61 = vld [vmem:[#allocation2 + $0x20] sm:$0xf0]  ;;  %v666_v1 = vld [vmem:[#allocation2 + $0x1c] sm:$0xf] }
  0x13   :  { %295 = vmatpush.bf16.msra.mxu2 %v605_v30  ;;  %v549_v63 = vor.u32 %v667_v61, %v548_v60  ;;  %v550_v3 = vld [vmem:[#allocation2 + $0x24] sm:$0xf0]  ;;  %v556_v4 = vld [vmem:[#allocation2 + $0x20] sm:$0xf]  ;;  %v668_v8 = vld [vmem:[#allocation2 + $0x28] sm:$0xf0] }
  0x14   :  { %v553_v7 = vor.u32 %v666_v1, %v550_v3  ;;  %v536_v9 = vld [vmem:[#allocation2] sm:$0xf]  ;;  %v557_v10 = vor.u32 %v668_v8, %v556_v4  ;;  %v664_v11 = vld [vmem:[#allocation2 + $0x8] sm:$0xf0]  ;;  %v663_v12 = vld [vmem:[#allocation2 + $0x4] sm:$0xf] }
  0x15   :  { %268 = vmatpush.bf16.msra.mxu0 %v585_v34  ;;  %v538_v13 = vld [vmem:[#allocation2 + $0xc] sm:$0xf0]  ;;  %v537_v15 = vor.u32 %v664_v11, %v536_v9  ;;  %v544_v17 = vld [vmem:[#allocation2 + $0x8] sm:$0xf]  ;;  %v665_v18 = vld [vmem:[#allocation2 + $0x10] sm:$0xf0] }
  0x16   :  { %282 = vmatpush.bf16.msra.mxu1 %v589_v38  ;;  %v541_v16 = vor.u32 %v663_v12, %v538_v13  ;;  %v545_v19 = vor.u32 %v665_v18, %v544_v17  ;;  %v698_v42 = vld [vmem:[%s882_s2] ss:$0 sm:$0xff] }
  0x17   :  { %296 = vmatpush.bf16.msra.mxu2 %v593_v39 }
  0x19   :  { %269 = vmatpush.bf16.msra.mxu0 %v573_v43 }
  0x1a   :  { %283 = vmatpush.bf16.msra.mxu1 %v577_v47 }
  0x1b   :  { %297 = vmatpush.bf16.msra.mxu2 %v581_v48  ;;  %v699_v48 = vld [vmem:[%s883_s3] ss:$0 sm:$0xff] }
  0x1d   :  { %270 = vmatpush.bf16.msra.mxu0 %v561_v52 }
  0x1e   :  { %284 = vmatpush.bf16.msra.mxu1 %v565_v56 }
  0x1f   :  { %298 = vmatpush.bf16.msra.mxu2 %v569_v57 }
  0x21   :  { %271 = vmatpush.bf16.msra.mxu0 %v549_v63 }
  0x22   :  { %285 = vmatpush.bf16.msra.mxu1 %v553_v7 }
  0x23   :  { %299 = vmatpush.bf16.msra.mxu2 %v557_v10 }
  0x25   :  { %272 = vmatpush.bf16.msra.mxu0 %v537_v15 }
  0x26   :  { %286 = vmatpush.bf16.msra.mxu1 %v541_v16 }
  0x27   :  { %300 = vmatpush.bf16.msra.mxu2 %v545_v19 }
  0x79   :  { %v51_v58 = vpop.xlane.xlu0 %50 }
  0x7a   :  { %v54_v59 = vmul.f32 0.03125, %v51_v58 }
  0x7b   :  { %v59_v62 = vpop.xlane.xlu1 %58 }
  0x7c   :  { %v64_v5 = vmul.f32 %v54_v59, %v54_v59  ;;  %v62_v6 = vmul.f32 0.03125, %v59_v62  ;;  %v68_v39 = vsub.f32 %v799_v0, %v54_v59  ;;  %v323_v62 = vlaneseq }
  0x7e   :  { %v66_v14 = vsub.f32 %v62_v6, %v64_v5  ;;  %v324_v63 = vshrl.u32 %v323_v62, 7  ;;  %v327_v1 = vand.u32 127, %v323_v62 }
  0x80   :  { %v70_v20 = vadd.f32 1e-05, %v66_v14  ;;  %vm328_vm6 = vcmp.le.s32.totalorder %v327_v1, %v324_v63  ;;  %v325_v3 = vadd.s32 8, %v324_v63  ;;  %vm331_vm9 = vcmp.ge.s32.totalorder %v327_v1, 8 }
  0x81   :  { %v53_v21 = vpop.xlane.xlu0 %52 }
  0x82   :  { %703 = vrsqrt.f32 %v70_v20  ;;  %v55_v22 = vmul.f32 0.03125, %v53_v21  ;;  %vm78_vm1 = vweird.f32 %v70_v20  ;;  %vm329_vm8 = vcmp.le.s32.totalorder %v327_v1, %v325_v3 }
  0x83   :  { %v61_v23 = vpop.xlane.xlu1 %60  ;;  %vm333_vm10 = vmand %vm329_vm8, %vm331_vm9 }
  0x84   :  { %v65_v24 = vmul.f32 %v55_v22, %v55_v22  ;;  %v63_v25 = vmul.f32 0.03125, %v61_v23  ;;  %v69_v44 = vsub.f32 %v807_v2, %v55_v22 }
  0x86   :  { %v67_v26 = vsub.f32 %v63_v25, %v65_v24 }
  0x88   :  { %v704_v27 = vpop.eup %703  ;;  %v71_v28 = vadd.f32 1e-05, %v67_v26 }
  0x89   :  { %v73_v29 = vmul.f32 %v704_v27, %v70_v20  ;;  %vm79_vm0 = vweird.f32 %v704_v27 }
  0x8a   :  { %705 = vrsqrt.f32 %v71_v28  ;;  %vm80_vm2 = vmor %vm78_vm1, %vm79_vm0  ;;  %vm88_vm4 = vweird.f32 %v71_v28 }
  0x8b   :  { %v74_v30 = vmul.f32 %v704_v27, %v73_v29 }
  0x8d   :  { %v75_v31 = vmul.f32 0.5, %v74_v30 }
  0x8f   :  { %v76_v32 = vsub.f32 1.5, %v75_v31 }
  0x90   :  { %v706_v33 = vpop.eup %705 }
  0x91   :  { %v77_v34 = vmul.f32 %v704_v27, %v76_v32  ;;  %v83_v35 = vmul.f32 %v706_v33, %v71_v28  ;;  %vm89_vm3 = vweird.f32 %v706_v33 }
  0x92   :  { %vm90_vm5 = vmor %vm88_vm4, %vm89_vm3 }
  0x93   :  { %v84_v36 = vmul.f32 %v706_v33, %v83_v35  ;;  %v81_v37 = vsel %vm80_vm2, %v704_v27, %v77_v34 }
  0x94   :  { %v92_v41 = vmul.f32 %v81_v37, %v68_v39  ;;  %v693_v39 = vld [vmem:[%s884_s4 + $0x30] sm:$0xff] }
  0x95   :  { %v85_v38 = vmul.f32 0.5, %v84_v36 }
  0x96   :  { %v97_v47 = vmul.f32 %v698_v42, %v92_v41  ;;  %v690_v41 = vld [vmem:[%s884_s4 + $0x18] sm:$0xff] }
  0x97   :  { %v86_v40 = vsub.f32 1.5, %v85_v38 }
  0x98   :  { %v102_v50 = vadd.f32 %v699_v48, %v97_v47 }
  0x99   :  { %v87_v43 = vmul.f32 %v706_v33, %v86_v40  ;;  %v691_v40 = vld [vmem:[%s884_s4 + $0x20] sm:$0xff] }
  0x9b   :  { %v91_v45 = vsel %vm90_vm5, %v706_v33, %v87_v43 }
  0x9c   :  { %v93_v46 = vmul.f32 %v91_v45, %v69_v44 }
  0x9e   :  { %v98_v49 = vmul.f32 %v698_v42, %v93_v46  ;;  %v689_v42 = vld [vmem:[%s884_s4 + $0x10] sm:$0xff]  ;;  %v688_v46 = vld [vmem:[%s884_s4 + $0x8] sm:$0xff] }
  0xa0   :  { %v103_v51 = vadd.f32 %v699_v48, %v98_v49 }
  0xa2   :  { %v104_v52 = vpack.c.bf16 %v103_v51, %v102_v50  ;;  %v687_v50 = vld [vmem:[%s884_s4] sm:$0xff] }
  0xa4   :  { %273 = vmatmul.bf16.vlgmr.msra.gmra.mxu0 %v104_v52  ;;  %287 = vmatmul.bf16.vlgmr.msra.gmra.mxu1 %v104_v52 }
  0xa5   :  { %301 = vmatmul.bf16.vlgmr.msra.gmra.mxu2 %v104_v52 }
 0x121   :  { %v288_v53 = vpop.f32.mrf.mxu1  ;;  %v274_v54 = vpop.f32.mrf.mxu0 }
 0x128   :  { %v302_v55 = vpop.f32.mrf.mxu2 }
 0x129   :  { %v290_v56 = vpop.f32.mrf.mxu1  ;;  %v276_v58 = vpop.f32.mrf.mxu0 }
 0x12a   :  { %v308_v57 = vpack.c.bf16 %v290_v56, %v288_v53  ;;  %v307_v60 = vpack.c.bf16 %v276_v58, %v274_v54 }
 0x12c   :  { %316 = vmatpush.bf16.xpose.msrb.mxu0 %v308_v57 }
 0x130   :  { %v304_v59 = vpop.f32.mrf.mxu2 }
 0x131   :  { %v356_v61 = vpack.c.bf16 %v304_v59, %v302_v55 }
 0x133   :  { %367 = vmatpush.bf16.msra.mxu3 %v356_v61  ;;  %317 = vmatmul.bf16.vlgmr.msrb.gmra.mxu0 %v307_v60 }
 0x1b0   :  { %v318_v4 = vpop.f32.mrf.mxu0 }
 0x1b1   :  { %v334_v5 = vsel %vm328_vm6, %v318_v4, -1e+30 }
 0x1b2   :  { %v337_v6 = vsel %vm336_vm7, %v334_v5, -inf }
 0x1b3   :  { %338 = vmax.xlane.f32.xlu2 %v337_v6 }
 0x1b8   :  { %v320_v7 = vpop.f32.mrf.mxu0 }
 0x1b9   :  { %v335_v8 = vsel %vm333_vm10, %v320_v7, -1e+30 }
 0x1ba   :  { %v340_v9 = vsel %vm336_vm7, %v335_v8, -inf }
 0x1bb   :  { %341 = vmax.xlane.f32.xlu2 %v340_v9 }
 0x226   :  { %v339_v10 = vpop.xlane.xlu2 %338 }
 0x227   :  { %v343_v11 = vsub.f32 %v334_v5, %v339_v10 }
 0x229   :  { %v345_v12 = vmul.f32 1.442695, %v343_v11  ;;  %v700_v11 = vld [vmem:[%s886_s6] ss:$0 sm:$0xff] }
 0x22b   :  { %707 = vpow2.f32 %v345_v12 }
 0x22e   :  { %v342_v13 = vpop.xlane.xlu2 %341 }
 0x22f   :  { %v344_v14 = vsub.f32 %v335_v8, %v342_v13 }
 0x231   :  { %v708_v15 = vpop.eup %707  ;;  %v347_v16 = vmul.f32 1.442695, %v344_v14 }
 0x232   :  { %v349_v17 = vsel %vm336_vm7, %v708_v15, 0.0 }
 0x233   :  { %709 = vpow2.f32 %v347_v16  ;;  %350 = vadd.xlane.f32.xlu0 %v349_v17  ;;  %v701_v17 = vld [vmem:[%s887_s7] ss:$0 sm:$0xff] }
 0x239   :  { %v710_v18 = vpop.eup %709 }
 0x23a   :  { %v352_v19 = vsel %vm336_vm7, %v710_v18, 0.0  ;;  %v355_v20 = vpack.c.bf16 %v710_v18, %v708_v15 }
 0x23b   :  { %353 = vadd.xlane.f32.xlu1 %v352_v19 }
 0x23c   :  { %630 = vmatmul.msk.bf16.vlgmr.msra.gmra.mxu3 %vm336_vm7, %v355_v20 }
 0x2a6   :  { %v351_v21 = vpop.xlane.xlu0 %350 }
 0x2a7   :  { %711 = vrcp.f32 %v351_v21 }
 0x2ad   :  { %v712_v23 = vpop.eup %711 }
 0x2ae   :  { %v354_v22 = vpop.xlane.xlu1 %353  ;;  %v376_v24 = vmul.f32 %v712_v23, %v351_v21 }
 0x2af   :  { %713 = vrcp.f32 %v354_v22 }
 0x2b0   :  { %v378_v25 = vsub.f32 2.0, %v376_v24 }
 0x2b2   :  { %v380_v28 = vmul.f32 %v712_v23, %v378_v25 }
 0x2b5   :  { %v714_v26 = vpop.eup %713 }
 0x2b6   :  { %v377_v27 = vmul.f32 %v714_v26, %v354_v22  ;;  %v702_v22 = vld [vmem:[%s885_s5] ss:$0 sm:$0xff] }
 0x2b8   :  { %v379_v31 = vsub.f32 2.0, %v377_v27 }
 0x2ba   :  { %v381_v34 = vmul.f32 %v714_v26, %v379_v31 }
 0x2bf   :  { %v369_v29 = vpop.f32.mrf.mxu3 }
 0x2c0   :  { %v382_v30 = vmul.f32 %v380_v28, %v369_v29 }
 0x2c2   :  { %v826_v32 = vadd.f32 %v382_v30, %v799_v0  ;;  %v694_v0 = vld [vmem:[%s884_s4 + $0x38] sm:$0xff] }
 0x2c3   :  { %511 = vmatpush.bf16.msrb.mxu3 %v694_v0 }
 0x2c4   :  { %388 = vadd.xlane.f32.xlu2 %v826_v32  ;;  %v394_v33 = vmul.f32 %v826_v32, %v826_v32 }
 0x2c6   :  { %396 = vadd.xlane.f32.xlu1 %v394_v33 }
 0x2c7   :  { %v371_v35 = vpop.f32.mrf.mxu3  ;;  %512 = vmatpush.bf16.msrb.mxu3 %v693_v39 }
 0x2c8   :  { %v383_v36 = vmul.f32 %v381_v34, %v371_v35 }
 0x2ca   :  { %v832_v37 = vadd.f32 %v383_v36, %v807_v2  ;;  %v692_v2 = vld [vmem:[%s884_s4 + $0x28] sm:$0xff] }
 0x2cb   :  { %513 = vmatpush.bf16.msrb.mxu3 %v692_v2 }
 0x2cc   :  { %390 = vadd.xlane.f32.xlu0 %v832_v37  ;;  %v395_v38 = vmul.f32 %v832_v37, %v832_v37 }
 0x2ce   :  { %398 = vadd.xlane.f32.xlu2 %v395_v38 }
 0x2cf   :  { %514 = vmatpush.bf16.msrb.mxu3 %v691_v40 }
 0x2d3   :  { %515 = vmatpush.bf16.msrb.mxu3 %v690_v41 }
 0x2d7   :  { %516 = vmatpush.bf16.msrb.mxu3 %v689_v42 }
 0x2db   :  { %517 = vmatpush.bf16.msrb.mxu3 %v688_v46 }
 0x2df   :  { %518 = vmatpush.bf16.msrb.mxu3 %v687_v50 }
 0x337   :  { %v389_v43 = vpop.xlane.xlu2 %388 }
 0x338   :  { %v392_v44 = vmul.f32 0.03125, %v389_v43 }
 0x339   :  { %v397_v45 = vpop.xlane.xlu1 %396 }
 0x33a   :  { %v402_v47 = vmul.f32 %v392_v44, %v392_v44  ;;  %v400_v48 = vmul.f32 0.03125, %v397_v45  ;;  %v406_v8 = vsub.f32 %v826_v32, %v392_v44 }
 0x33c   :  { %v404_v49 = vsub.f32 %v400_v48, %v402_v47 }
 0x33e   :  { %v408_v51 = vadd.f32 1e-05, %v404_v49 }
 0x33f   :  { %v391_v52 = vpop.xlane.xlu0 %390 }
 0x340   :  { %715 = vrsqrt.f32 %v408_v51  ;;  %v393_v53 = vmul.f32 0.03125, %v391_v52  ;;  %vm416_vm12 = vweird.f32 %v408_v51 }
 0x341   :  { %v399_v54 = vpop.xlane.xlu2 %398 }
 0x342   :  { %v403_v55 = vmul.f32 %v393_v53, %v393_v53  ;;  %v401_v56 = vmul.f32 0.03125, %v399_v54  ;;  %v407_v13 = vsub.f32 %v832_v37, %v393_v53 }
 0x344   :  { %v405_v57 = vsub.f32 %v401_v56, %v403_v55 }
 0x346   :  { %v716_v58 = vpop.eup %715  ;;  %v409_v59 = vadd.f32 1e-05, %v405_v57 }
 0x347   :  { %v411_v60 = vmul.f32 %v716_v58, %v408_v51  ;;  %vm417_vm11 = vweird.f32 %v716_v58 }
 0x348   :  { %717 = vrsqrt.f32 %v409_v59  ;;  %vm418_vm13 = vmor %vm416_vm12, %vm417_vm11  ;;  %vm426_vm15 = vweird.f32 %v409_v59 }
 0x349   :  { %v412_v61 = vmul.f32 %v716_v58, %v411_v60 }
 0x34b   :  { %v413_v62 = vmul.f32 0.5, %v412_v61 }
 0x34d   :  { %v414_v63 = vsub.f32 1.5, %v413_v62 }
 0x34e   :  { %v718_v1 = vpop.eup %717 }
 0x34f   :  { %v415_v3 = vmul.f32 %v716_v58, %v414_v63  ;;  %v421_v4 = vmul.f32 %v718_v1, %v409_v59  ;;  %vm427_vm14 = vweird.f32 %v718_v1 }
 0x350   :  { %vm428_vm0 = vmor %vm426_vm15, %vm427_vm14 }
 0x351   :  { %v422_v5 = vmul.f32 %v718_v1, %v421_v4  ;;  %v419_v6 = vsel %vm418_vm13, %v716_v58, %v415_v3 }
 0x352   :  { %v430_v10 = vmul.f32 %v419_v6, %v406_v8 }
 0x353   :  { %v423_v7 = vmul.f32 0.5, %v422_v5 }
 0x354   :  { %v435_v16 = vmul.f32 %v700_v11, %v430_v10 }
 0x355   :  { %v424_v9 = vsub.f32 1.5, %v423_v7 }
 0x356   :  { %v440_v19 = vadd.f32 %v701_v17, %v435_v16 }
 0x357   :  { %v425_v12 = vmul.f32 %v718_v1, %v424_v9 }
 0x359   :  { %v429_v14 = vsel %vm428_vm0, %v718_v1, %v425_v12 }
 0x35a   :  { %v431_v15 = vmul.f32 %v429_v14, %v407_v13 }
 0x35c   :  { %v436_v18 = vmul.f32 %v700_v11, %v431_v15 }
 0x35e   :  { %v441_v20 = vadd.f32 %v701_v17, %v436_v18 }
 0x360   :  { %v442_v21 = vpack.c.bf16 %v441_v20, %v440_v19 }
 0x362   :  { %519 = vmatmul.bf16.vlgmr.msrb.gmra.mxu3 %v442_v21 }
 0x3e5   :  { %v520_v23 = vpop.f32.mrf.mxu3 }
 0x3e6   :  { %v521_v24 = vadd.f32 %v702_v22, %v520_v23 }
 0x3e8   :  { %v525_v25 = vadd.f32 %v521_v24, %v826_v32 }
 0x3ea   :  { %527 = vst [vmem:[%s888_s8] sm:$0xff] %v525_v25 }
 0x3ed   :  { %v522_v26 = vpop.f32.mrf.mxu3 }
 0x3ee   :  { %v523_v27 = vadd.f32 %v702_v22, %v522_v26 }
 0x3f0   :  { %v526_v28 = vadd.f32 %v523_v27, %v832_v37 }
 0x3f2   :  { %528 = vst [vmem:[%s888_s8 + $0x8] sm:$0xff] %v526_v28 }
 0x3f3   :  { %533 = vsyncpa [#allocation3], 1 }

</bundles_post_ra>
